<compile_context>
chip_gen: v7x
topology: tpu7x:2x2x1
jax: 0.10.0
libtpu: 0.0.40
codegen_flags: <defaults>
</compile_context>

<pallas_src>
import functools

import jax
import jax.numpy as jnp
from jax.experimental import pallas as pl
from jax.experimental.pallas import tpu as pltpu


def autoencoder_kernel(x_ref, wg_ref, bg_ref, wh_ref, bh_ref, out_ref):
    # x:(TB,Q) bf16 | wg:(K,Q) bf16 | bg:(1,K) f32 | wh:(Q,K) bf16 | bh:(1,Q) f32
    x = x_ref[...]

    # hid = sigmoid(x @ Wg^T + bg): contract Q (axis 1 of x with axis 1 of wg).
    hid = jax.lax.dot_general(
        x, wg_ref[...],
        dimension_numbers=(((1,), (1,)), ((), ())),
        preferred_element_type=jnp.float32,
    )
    hid = jax.nn.sigmoid(hid + bg_ref[...])          # f32 elementwise

    # out = sigmoid(hid @ Wh^T + bh): contract K (axis 1 of hid with axis 1 of wh).
    out = jax.lax.dot_general(
        hid.astype(wh_ref.dtype), wh_ref[...],
        dimension_numbers=(((1,), (1,)), ((), ())),
        preferred_element_type=jnp.float32,
    )
    out = jax.nn.sigmoid(out + bh_ref[...])          # f32 elementwise

    out_ref[...] = out.astype(out_ref.dtype)


def prepare_params(wg, bg, wh, bh):
    """One-time conversion to kernel-ready dtypes/layouts.

    Keeps the PyTorch storage layout (no transposes); casts weights to bf16
    for the MXU and reshapes biases to lane-dense (1, N) f32 rows.
    """
    K, Q = wg.shape
    assert wh.shape == (Q, K) and bg.shape == (K,) and bh.shape == (Q,)
    return (
        wg.astype(jnp.bfloat16),          # (K, Q)
        bg.reshape(1, K).astype(jnp.float32),
        wh.astype(jnp.bfloat16),          # (Q, K)
        bh.reshape(1, Q).astype(jnp.float32),
    )


@functools.partial(jax.jit, static_argnames=("block_b",))
def autoencoder_forward(x, params, block_b=128):
    """x: (B, Q) float32; params: output of prepare_params(...)."""
    wg_bf, bg2, wh_bf, bh2 = params
    B, Q = x.shape
    K = wg_bf.shape[0]

    # Batch tile: full batch if small, otherwise block_b rows.
    tb = B if B <= block_b else block_b
    assert B % tb == 0, "batch must be a multiple of the batch tile"

    x_bf = x.astype(jnp.bfloat16)

    # Weights/biases: constant block index -> fetched once, VMEM-resident.
    resident = lambda shape: pl.BlockSpec(shape, lambda i: (0,) * len(shape))

    return pl.pallas_call(
        autoencoder_kernel,
        out_shape=jax.ShapeDtypeStruct((B, Q), x.dtype),
        grid=(B // tb,),
        in_specs=[
            pl.BlockSpec((tb, Q), lambda i: (i, 0)),   # streamed batch tiles
            resident((K, Q)),
            resident((1, K)),
            resident((Q, K)),
            resident((1, Q)),
        ],
        out_specs=pl.BlockSpec((tb, Q), lambda i: (i, 0)),
        compiler_params=pltpu.CompilerParams(
            dimension_semantics=("parallel",),         # v7x: shard batch over 2 TCs
            vmem_limit_bytes=16 << 20,                 # blocks need only a few MiB
        ),
    )(x_bf, wg_bf, bg2, wh_bf, bh2)


def reference_forward_f32(x, wg, bg, wh, bh):
    hid = jax.nn.sigmoid(x @ wg.T + bg)
    return jax.nn.sigmoid(hid @ wh.T + bh)


def reference_forward_bf16(x, wg, bg, wh, bh):
    # Same bf16-operand / f32-accumulate math as the kernel.
    xb, wgb, whb = (a.astype(jnp.bfloat16) for a in (x, wg, wh))
    hid = jax.nn.sigmoid(
        jnp.dot(xb, wgb.T, preferred_element_type=jnp.float32) + bg)
    return jax.nn.sigmoid(
        jnp.dot(hid.astype(jnp.bfloat16), whb.T,
                preferred_element_type=jnp.float32) + bh)


if __name__ == "__main__":
    # Small shapes consistent with the module: num_question=256, k=128, batch=256.
    B, Q, K = 256, 256, 128

    key = jax.random.PRNGKey(0)
    kx, kwg, kbg, kwh, kbh = jax.random.split(key, 5)

    x = jax.random.uniform(kx, (B, Q), dtype=jnp.float32)
    # PyTorch-style uniform(-1/sqrt(fan_in), 1/sqrt(fan_in)) init.
    wg = jax.random.uniform(kwg, (K, Q), jnp.float32, -1.0, 1.0) / jnp.sqrt(Q)
    bg = jax.random.uniform(kbg, (K,), jnp.float32, -1.0, 1.0) / jnp.sqrt(Q)
    wh = jax.random.uniform(kwh, (Q, K), jnp.float32, -1.0, 1.0) / jnp.sqrt(K)
    bh = jax.random.uniform(kbh, (Q,), jnp.float32, -1.0, 1.0) / jnp.sqrt(K)

    # One-time weight prep (no per-call transposes or casts of the weights).
    params = prepare_params(wg, bg, wh, bh)

    out = autoencoder_forward(x, params)
    out = jax.block_until_ready(out)
    assert out.shape == (B, Q), out.shape

    # Tight check vs a reference doing the same bf16-operand / f32-accum math.
    ref_bf16 = reference_forward_bf16(x, wg, bg, wh, bh)
    assert jnp.allclose(out, ref_bf16, atol=1e-4, rtol=0), "mismatch vs bf16 reference"

    # Loose check vs the exact f32 PyTorch-equivalent forward (bf16 operand error).
    ref_f32 = reference_forward_f32(x, wg, bg, wh, bh)
    assert jnp.allclose(out, ref_f32, atol=2e-2, rtol=0), "mismatch vs f32 reference"

    # TODO(synk): get_weight_norm() is a training-time regularizer (parameter
    # norm), not part of the forward pass, so it is not implemented as a kernel.

    print("KERNEL_OK")
</pallas_src>

<mosaic_0001>
module attributes {stable_mosaic.version = 11 : i64} {
  func.func @autoencoder_kernel(%arg0: i32, %arg1: memref<128x256xbf16, #tpu.memory_space<vmem>>, %arg2: memref<128x256xbf16, #tpu.memory_space<vmem>>, %arg3: memref<1x128xf32, #tpu.memory_space<vmem>>, %arg4: memref<256x128xbf16, #tpu.memory_space<vmem>>, %arg5: memref<1x256xf32, #tpu.memory_space<vmem>>, %arg6: memref<128x256xf32, #tpu.memory_space<vmem>>) attributes {dimension_semantics = [#tpu.dimension_semantics<parallel>], iteration_bounds = array<i64: 2>, scalar_prefetch = 0 : i64, scratch_operands = 0 : i64, tpu.core_type = #tpu.core_type<tc>, window_params = [{transform_indices = @transform_0, window_bounds = array<i64: 128, 256>}, {pipeline_mode = #tpu.pipeline_mode<synchronous>, transform_indices = @transform_1, window_bounds = array<i64: 128, 256>}, {pipeline_mode = #tpu.pipeline_mode<synchronous>, transform_indices = @transform_2, window_bounds = array<i64: 1, 128>}, {pipeline_mode = #tpu.pipeline_mode<synchronous>, transform_indices = @transform_3, window_bounds = array<i64: 256, 128>}, {pipeline_mode = #tpu.pipeline_mode<synchronous>, transform_indices = @transform_4, window_bounds = array<i64: 1, 256>}, {transform_indices = @transform_5, window_bounds = array<i64: 128, 256>}]} {
    %c0 = arith.constant 0 : index
    %c0_0 = arith.constant 0 : index
    %0 = vector.load %arg1[%c0, %c0_0] : memref<128x256xbf16, #tpu.memory_space<vmem>>, vector<128x256xbf16>
    %c0_1 = arith.constant 0 : index
    %c0_2 = arith.constant 0 : index
    %1 = vector.load %arg2[%c0_1, %c0_2] : memref<128x256xbf16, #tpu.memory_space<vmem>>, vector<128x256xbf16>
    %cst = arith.constant dense<0.000000e+00> : vector<128x128xf32>
    %2 = tpu.matmul %0, %1, %cst {dimension_numbers = #tpu.dot_dimension_numbers<[1], [1], [0], [0], [0, 0, 1, 0], [], []>} : vector<128x256xbf16>, vector<128x256xbf16>, vector<128x128xf32> -> vector<128x128xf32>
    %c0_3 = arith.constant 0 : index
    %c0_4 = arith.constant 0 : index
    %3 = vector.load %arg3[%c0_3, %c0_4] : memref<1x128xf32, #tpu.memory_space<vmem>>, vector<1x128xf32>
    %4 = vector.broadcast %3 : vector<1x128xf32> to vector<128x128xf32>
    %5 = arith.addf %2, %4 : vector<128x128xf32>
    %6 = arith.negf %5 : vector<128x128xf32>
    %7 = math.exp %6 : vector<128x128xf32>
    %cst_5 = arith.constant 1.000000e+00 : f32
    %8 = vector.broadcast %cst_5 : f32 to vector<128x128xf32>
    %9 = arith.addf %8, %7 : vector<128x128xf32>
    %10 = arith.divf %8, %9 : vector<128x128xf32>
    %11 = arith.truncf %10 : vector<128x128xf32> to vector<128x128xbf16>
    %c0_6 = arith.constant 0 : index
    %c0_7 = arith.constant 0 : index
    %12 = vector.load %arg4[%c0_6, %c0_7] : memref<256x128xbf16, #tpu.memory_space<vmem>>, vector<256x128xbf16>
    %cst_8 = arith.constant dense<0.000000e+00> : vector<128x256xf32>
    %13 = tpu.matmul %11, %12, %cst_8 {dimension_numbers = #tpu.dot_dimension_numbers<[1], [1], [0], [0], [0, 0, 1, 0], [], []>} : vector<128x128xbf16>, vector<256x128xbf16>, vector<128x256xf32> -> vector<128x256xf32>
    %c0_9 = arith.constant 0 : index
    %c0_10 = arith.constant 0 : index
    %14 = vector.load %arg5[%c0_9, %c0_10] : memref<1x256xf32, #tpu.memory_space<vmem>>, vector<1x256xf32>
    %15 = vector.broadcast %14 : vector<1x256xf32> to vector<128x256xf32>
    %16 = arith.addf %13, %15 : vector<128x256xf32>
    %17 = arith.negf %16 : vector<128x256xf32>
    %18 = math.exp %17 : vector<128x256xf32>
    %cst_11 = arith.constant 1.000000e+00 : f32
    %19 = vector.broadcast %cst_11 : f32 to vector<128x256xf32>
    %20 = arith.addf %19, %18 : vector<128x256xf32>
    %21 = arith.divf %19, %20 : vector<128x256xf32>
    %c0_12 = arith.constant 0 : index
    %c0_13 = arith.constant 0 : index
    %22 = vector.load %arg6[%c0_12, %c0_13] : memref<128x256xf32, #tpu.memory_space<vmem>>, vector<128x256xf32>
    tpu.vector_store %arg6[%c0_12, %c0_13], %21 {strides = array<i32>} : memref<128x256xf32, #tpu.memory_space<vmem>>, vector<128x256xf32>,
    return
  }
  func.func @transform_0(%arg0: i32) -> (i32, i32) {
    %c0_i32 = arith.constant 0 : i32
    %c0_i32_0 = arith.constant 0 : i32
    return %arg0, %c0_i32 : i32, i32
  }
  func.func @transform_1(%arg0: i32) -> (i32, i32) {
    %c0_i32 = arith.constant 0 : i32
    %c0_i32_0 = arith.constant 0 : i32
    %c0_i32_1 = arith.constant 0 : i32
    return %c0_i32, %c0_i32_0 : i32, i32
  }
  func.func @transform_2(%arg0: i32) -> (i32, i32) {
    %c0_i32 = arith.constant 0 : i32
    %c0_i32_0 = arith.constant 0 : i32
    %c0_i32_1 = arith.constant 0 : i32
    return %c0_i32, %c0_i32_0 : i32, i32
  }
  func.func @transform_3(%arg0: i32) -> (i32, i32) {
    %c0_i32 = arith.constant 0 : i32
    %c0_i32_0 = arith.constant 0 : i32
    %c0_i32_1 = arith.constant 0 : i32
    return %c0_i32, %c0_i32_0 : i32, i32
  }
  func.func @transform_4(%arg0: i32) -> (i32, i32) {
    %c0_i32 = arith.constant 0 : i32
    %c0_i32_0 = arith.constant 0 : i32
    %c0_i32_1 = arith.constant 0 : i32
    return %c0_i32, %c0_i32_0 : i32, i32
  }
  func.func @transform_5(%arg0: i32) -> (i32, i32) {
    %c0_i32 = arith.constant 0 : i32
    %c0_i32_0 = arith.constant 0 : i32
    return %arg0, %c0_i32 : i32, i32
  }
}

</mosaic_0001>

<bundles_post_ra>
// kernel: autoencoder_forward.1
= control target key start
LH: loop header
LB: loop body
LE: loop exit
PB: predicated region body
PF: predicated region fallthrough
CT: control target
= control target key end

     0   :  { %10 = vsyncpa [#allocation3], 0  ;;  %s2039_s0 = inlined_call_operand.vmem [shape: bf16[256,256], index: 0, kind: input, shape index: {}]   ;;  %s2040_s1 = inlined_call_operand.vmem [shape: bf16[128,256], index: 1, kind: input, shape index: {}]   ;;  %s2041_s2 = inlined_call_operand.vmem [shape: f32[1,128], index: 2, kind: input, shape index: {}]   ;;  %s2042_s3 = inlined_call_operand.vmem [shape: bf16[256,128], index: 3, kind: input, shape index: {}]   ;;  %s2043_s4 = inlined_call_operand.vmem [shape: f32[1,256], index: 4, kind: input, shape index: {}]   ;;  %s2044_s5 = inlined_call_operand.hbm [shape: f32[256,256], index: 5, kind: output, shape index: {}]  }
   0x1   :  { %12 = vsyncpa [#allocation3 + $0x1], 0  ;;  %s1724_s18 = smov 0   ;;  %s1726_s19 = smov 0  }
   0x2   :  { %s1728_s20 = smov 0   ;;  %s1730_s21 = smov 0  }
   0x3 LB: > { %s1745_s22 = sadd.s32 4294967295, %s1689_s21   ;;  %s1184_s23 = sadd.s32 4294967294, %s1689_s21   ;;  %s1689_s21 = sphi %s1730_s21, %s2050_s21   ;;  %s1685_s20 = sphi %s1728_s20, %s2049_s20   ;;  %s1681_s19 = sphi %s1726_s19, %s2048_s19   ;;  %s1677_s18 = sphi %s1724_s18, %s2047_s18  }
   0x4   : > { %s1749_s24 = sadd.s32 1, %s1689_s21   ;;  %s135_s25 = sadd.s32 1, %s1685_s20 }
   0x5   : > { %s132_s26 = ssub.s32 %s1689_s21, %s1749_s24  ;;  %p145_p0 = scmp.ne.s32.totalorder %s1685_s20, %s1681_s19 }
   0x6   : > { %p133_p1 = scmp.eq.s32.totalorder %s132_s26, 0  ;;  %p146_p2 = scmp.eq.s32.totalorder %s1745_s22, 1 }
   0x7   : > { %p151_p3 = scmp.ne.s32.totalorder %s1681_s19, %s1677_s18  ;;  %p152_p4 = scmp.eq.s32.totalorder %s1184_s23, 1 }
   0x8   : > { %s1760_s27 = scalar_select %p133_p1, %s1685_s20, %s135_s25  }
   0x9   : > { %p1762_p5 = por %p146_p2, %p145_p0  ;;  %p1766_p6 = por %p152_p4, %p151_p3 }
   0xa   : > { %p1187_p7 = scmp.ge.s32.totalorder %s1689_s21, 1  ;;  %p192_p8 = scmp.lt.s32.totalorder %s1689_s21, 3 }
   0xc   : > { %p193_p9 = pnand %p1187_p7, %p192_p8 }
   0xd   : > { %v1371_v0 = vld [vmem:[%s2040_s1 + $0x4] ss:$8 sps:$4 sm:$0xff] (!%p193_p9)   ;;  %s1189_s7 = sshll.u32 (!%p193_p9), %s1745_s22, 4  ;;  %v1373_v1 = vld [vmem:[%s2040_s1] ss:$8 sps:$4 sm:$0xff] (!%p193_p9)   ;;  %v1423_v15 = vld [vmem:[%s2042_s3 + $0x50] sm:$0xff] (!%p193_p9)  }
   0xe   : > { %196 = sbr.rel (%p193_p9) target bundleno = 640 (0x280), region = 40  ;;  %p222_p10 = scmp.lt.s32.totalorder (!%p193_p9), %s1189_s7, 31  ;;  %429 = vmatprep.subr.bf16.mxu0 (!%p193_p9), %v1371_v0  ;;  %v1374_v2 = vld [vmem:[%s2040_s1 + $0x14] ss:$8 sps:$4 sm:$0xff] (!%p193_p9)   ;;  %v1376_v3 = vld [vmem:[%s2040_s1 + $0x10] ss:$8 sps:$4 sm:$0xff] (!%p193_p9)  }
   0xf   : > { %430 = vmatpush1.bf16.xpose.msra.mxu0 (!%p193_p9), %v1373_v1  ;;  %v1377_v4 = vld [vmem:[%s2040_s1 + $0x24] ss:$8 sps:$4 sm:$0xff] (!%p193_p9)   ;;  %v1379_v6 = vld [vmem:[%s2040_s1 + $0x20] ss:$8 sps:$4 sm:$0xff] (!%p193_p9)   ;;  %v1380_v7 = vld [vmem:[%s2040_s1 + $0x34] ss:$8 sps:$4 sm:$0xff] (!%p193_p9)  }
  0x10   : > { %431 = vmatprep.subr.bf16.mxu0 (!%p193_p9), %v1374_v2  ;;  %v1382_v8 = vld [vmem:[%s2040_s1 + $0x30] ss:$8 sps:$4 sm:$0xff] (!%p193_p9)   ;;  %v1383_v9 = vld [vmem:[%s2040_s1 + $0x44] ss:$8 sps:$4 sm:$0xff] (!%p193_p9)   ;;  %v1385_v13 = vld [vmem:[%s2040_s1 + $0x40] ss:$8 sps:$4 sm:$0xff] (!%p193_p9)  }
  0x11   : > { %v1419_v10 = vld [vmem:[%s2042_s3 + $0x40] sm:$0xff] (!%p193_p9)   ;;  %v1421_v12 = vld [vmem:[%s2042_s3 + $0x48] sm:$0xff] (!%p193_p9)   ;;  %v1386_v16 = vld [vmem:[%s2040_s1 + $0x54] ss:$8 sps:$4 sm:$0xff] (!%p193_p9)   ;;  %s218_s16 = sand.u32 (!%p193_p9), 1, %s1681_s19   ;;  %s1297_s26 = sshll.u32 (!%p193_p9), %s1745_s22, 12 }
  0x12   : > { %v1420_v11 = vld [vmem:[%s2042_s3] sm:$0xff] (!%p193_p9)   ;;  %1298 = vmatprep.subr.bf16.mxu1 (!%p193_p9), %v1419_v10  ;;  %v1422_v14 = vld [vmem:[%s2042_s3 + $0x8] sm:$0xff] (!%p193_p9)   ;;  %v1424_v17 = vld [vmem:[%s2042_s3 + $0x10] sm:$0xff] (!%p193_p9)   ;;  %s1188_s17 = sshll.u32 (!%p193_p9), %s218_s16, 8  ;;  %s1998_s22 = scalar_lea.sflag (!%p193_p9), [#allocation3], %s218_s16 }
  0x13   : > { %1299 = vmatpush3.bf16.xpose.msra.mxu1 (!%p193_p9), %v1420_v11  ;;  %v1425_v18 = vld [vmem:[%s2042_s3 + $0x58] sm:$0xff] (!%p193_p9)   ;;  %v1389_v20 = vld [vmem:[%s2040_s1 + $0x64] ss:$8 sps:$4 sm:$0xff] (!%p193_p9)   ;;  %v1391_v22 = vld [vmem:[%s2040_s1 + $0x60] ss:$8 sps:$4 sm:$0xff] (!%p193_p9)   ;;  %s1937_s23 = scalar_lea.vmem (!%p193_p9), [#allocation2], %s1188_s17 }
  0x14   : > { %1300 = vmatprep.subr.bf16.mxu1 (!%p193_p9), %v1421_v12  ;;  %v1388_v19 = vld [vmem:[%s2040_s1 + $0x50] ss:$8 sps:$4 sm:$0xff] (!%p193_p9)   ;;  %v1392_v23 = vld [vmem:[%s2040_s1 + $0x74] ss:$8 sps:$4 sm:$0xff] (!%p193_p9)   ;;  %v1427_v40 = vld [vmem:[%s2042_s3 + $0x60] sm:$0xff] (!%p193_p9)   ;;  %s1691_s9 = smov (!%p193_p9), [#allocation2]  }
  0x15   : > { %s2052_s7 = smov (!%p222_p10, %s1189_s7), 31  ;;  %v1426_v21 = vld [vmem:[%s2042_s3 + $0x18] sm:$0xff]   ;;  %v1428_v41 = vld [vmem:[%s2042_s3 + $0x20] sm:$0xff]   ;;  %v1429_v42 = vld [vmem:[%s2042_s3 + $0x68] sm:$0xff]   ;;  %s1631_s10 = sshll.u32 %s1691_s9, 4  ;;  %s1632_s10 = int_to_ptr.vmem [resolvable:$false] %s1631_s10 }
  0x16   : > { %s1295_s12 = sshll.u32 %s2052_s7, 3  ;;  %v1394_v24 = vld [vmem:[%s2040_s1 + $0x70] ss:$8 sps:$4 sm:$0xff]   ;;  %v1430_v43 = vld [vmem:[%s2042_s3 + $0x28] sm:$0xff]   ;;  %v1893_v48 = vld [vmem:[%s2041_s2] ss:$0 sm:$0xff]  ;;  %s1989_s7 = scalar_lea.hbm %s2044_s5, %s1297_s26 }
  0x17   : > { %s1791_s25 = scalar_lea.vmem %s2039_s0, %s1295_s12  ;;  %432 = vmatpush1.bf16.xpose.msra.mxu0 %v1376_v3  ;;  %v1431_v44 = vld [vmem:[%s2042_s3 + $0x70] sm:$0xff]   ;;  %v1433_v46 = vld [vmem:[%s2042_s3 + $0x78] sm:$0xff]   ;;  %s1633_s11 = scalar_lea.vmem %s1632_s10, 8192 }
  0x18   : > { %v1397_v5 = vld [vmem:[%s1791_s25 + $0x4] ss:$8 sps:$4 sm:$0xff]   ;;  %433 = vmatprep.subr.bf16.mxu0 %v1377_v4  ;;  %v1395_v25 = vld [vmem:[%s1791_s25] ss:$8 sps:$4 sm:$0xff]   ;;  %v1398_v26 = vld [vmem:[%s1791_s25 + $0x14] ss:$8 sps:$4 sm:$0xff]  }
  0x19   : > { %461 = vmatprep.mubr.bf16.mxu0 %v1397_v5  ;;  %v1400_v27 = vld [vmem:[%s1791_s25 + $0x10] ss:$8 sps:$4 sm:$0xff]   ;;  %v1401_v28 = vld [vmem:[%s1791_s25 + $0x24] ss:$8 sps:$4 sm:$0xff]   ;;  %v1403_v29 = vld [vmem:[%s1791_s25 + $0x20] ss:$8 sps:$4 sm:$0xff]  }
  0x1a   : > { %v1404_v30 = vld [vmem:[%s1791_s25 + $0x34] ss:$8 sps:$4 sm:$0xff]   ;;  %v1406_v31 = vld [vmem:[%s1791_s25 + $0x30] ss:$8 sps:$4 sm:$0xff]   ;;  %v1407_v32 = vld [vmem:[%s1791_s25 + $0x44] ss:$8 sps:$4 sm:$0xff]  }
  0x1b   : > { %1301 = vmatpush3.bf16.xpose.msra.mxu1 %v1422_v14  ;;  %v1409_v33 = vld [vmem:[%s1791_s25 + $0x40] ss:$8 sps:$4 sm:$0xff]   ;;  %v1410_v34 = vld [vmem:[%s1791_s25 + $0x54] ss:$8 sps:$4 sm:$0xff]   ;;  %v1412_v35 = vld [vmem:[%s1791_s25 + $0x50] ss:$8 sps:$4 sm:$0xff]  }
  0x1c   : > { %1302 = vmatprep.subr.bf16.mxu1 %v1423_v15  ;;  %v1413_v36 = vld [vmem:[%s1791_s25 + $0x64] ss:$8 sps:$4 sm:$0xff]   ;;  %v1415_v37 = vld [vmem:[%s1791_s25 + $0x60] ss:$8 sps:$4 sm:$0xff]   ;;  %v1416_v38 = vld [vmem:[%s1791_s25 + $0x74] ss:$8 sps:$4 sm:$0xff]  }
  0x1d   : > { %v1418_v39 = vld [vmem:[%s1791_s25 + $0x70] ss:$8 sps:$4 sm:$0xff]   ;;  %s1122_s25 = sshll.u32 %s1937_s23, 4  ;;  %s1991_s25 = int_to_ptr.vmem [resolvable:$true] %s1122_s25 }
  0x1e   : > { %v1432_v45 = vld [vmem:[%s2042_s3 + $0x30] sm:$0xff]   ;;  %v1434_v47 = vld [vmem:[%s2042_s3 + $0x38] sm:$0xff]   ;;  %s1627_s8 = scalar_lea.vmem %s1991_s25, 4096  ;;  %p1634_p0 = scmp.lt.s32.totalorder %s1991_s25, %s1632_s10 }
  0x1f   : > { %434 = vmatpush1.bf16.xpose.msra.mxu0 %v1379_v6  ;;  %p1628_p11 = scmp.ne.s32.totalorder %s1991_s25, %s1627_s8  ;;  %p1635_p1 = scmp.lt.s32.totalorder %s1633_s11, %s1627_s8 }
  0x20   : > { %435 = vmatprep.subr.bf16.mxu0 %v1380_v7 }
  0x21   : > { %p1629_p12 = pnand %p1628_p11, %p1762_p5  ;;  %p1636_p2 = por %p1635_p1, %p1634_p0 }
  0x23   : > { %1303 = vmatpush3.bf16.xpose.msra.mxu1 %v1424_v17  ;;  %p1630_p13 = pneg %p1629_p12 }
  0x24   : > { %1304 = vmatprep.subr.bf16.mxu1 %v1425_v18 }
  0x25   : > { %p1637_p3 = pnand %p1636_p2, %p1630_p13 }
  0x27   : > { %436 = vmatpush1.bf16.xpose.msra.mxu0 %v1382_v8 }
  0x28   : > { %437 = vmatprep.subr.bf16.mxu0 %v1383_v9 }
  0x2b   : > { %1305 = vmatpush3.bf16.xpose.msra.mxu1 %v1426_v21 }
  0x2c   : > { %1306 = vmatprep.subr.bf16.mxu1 %v1427_v40 }
  0x2f   : > { %438 = vmatpush1.bf16.xpose.msra.mxu0 %v1385_v13 }
  0x30   : > { %439 = vmatprep.subr.bf16.mxu0 %v1386_v16 }
  0x33   : > { %1307 = vmatpush3.bf16.xpose.msra.mxu1 %v1428_v41 }
  0x34   : > { %1308 = vmatprep.subr.bf16.mxu1 %v1429_v42 }
  0x37   : > { %440 = vmatpush1.bf16.xpose.msra.mxu0 %v1388_v19 }
  0x38   : > { %441 = vmatprep.subr.bf16.mxu0 %v1389_v20 }
  0x3b   : > { %1309 = vmatpush3.bf16.xpose.msra.mxu1 %v1430_v43 }
  0x3c   : > { %1310 = vmatprep.subr.bf16.mxu1 %v1431_v44 }
  0x3f   : > { %442 = vmatpush1.bf16.xpose.msra.mxu0 %v1391_v22 }
  0x40   : > { %443 = vmatprep.subr.bf16.mxu0 %v1392_v23 }
  0x43   : > { %1311 = vmatpush3.bf16.xpose.msra.mxu1 %v1432_v45 }
  0x44   : > { %1312 = vmatprep.subr.bf16.mxu1 %v1433_v46 }
  0x47   : > { %444 = vmatpush1.bf16.xpose.msra.mxu0 %v1394_v24 }
  0x4b   : > { %1313 = vmatpush3.bf16.xpose.msra.mxu1 %v1434_v47 }
  0x4e   : > { %462 = vmatmul.mubr.bf16.vlgmr.msra.gmra.mrb[0].mxu0 %v1395_v25 }
  0x4f   : > { %469 = vmatprep.mubr.bf16.mxu0 %v1398_v26 }
  0x56   : > { %470 = vmatmul.mubr.bf16.gmra.mrb[4].mxu0 %v1400_v27 }
  0x57   : > { %477 = vmatprep.mubr.bf16.mxu0 %v1401_v28 }
  0x5e   : > { %478 = vmatmul.mubr.bf16.gmra.mrb[8].mxu0 %v1403_v29 }
  0x5f   : > { %485 = vmatprep.mubr.bf16.mxu0 %v1404_v30 }
  0x66   : > { %486 = vmatmul.mubr.bf16.gmra.mrb[12].mxu0 %v1406_v31 }
  0x67   : > { %493 = vmatprep.mubr.bf16.mxu0 %v1407_v32 }
  0x6e   : > { %494 = vmatmul.mubr.bf16.gmra.mrb[16].mxu0 %v1409_v33 }
  0x6f   : > { %501 = vmatprep.mubr.bf16.mxu0 %v1410_v34 }
  0x76   : > { %502 = vmatmul.mubr.bf16.gmra.mrb[20].mxu0 %v1412_v35 }
  0x77   : > { %509 = vmatprep.mubr.bf16.mxu0 %v1413_v36 }
  0x7e   : > { %510 = vmatmul.mubr.bf16.gmra.mrb[24].mxu0 %v1415_v37 }
  0x7f   : > { %517 = vmatprep.mubr.bf16.mxu0 %v1416_v38 }
  0x86   : > { %518 = vmatmul.mubr.bf16.gmra.mrb[28].mxu0 %v1418_v39 }
 0x121   : > { %v463_v49 = vpop.f32.mrb[0].mxu0 }
 0x122   : > { %v464_v50 = vadd.f32 %v1893_v48, %v463_v49  ;;  %v465_v51 = vpop.f32.mrb[1].mxu0 }
 0x123   : > { %v466_v52 = vpop.f32.mrb[2].mxu0 }
 0x124   : > { %v1225_v53 = vmul.f32 -1.442695, %v464_v50  ;;  %v467_v54 = vadd.f32 %v1893_v48, %v466_v52  ;;  %v468_v55 = vpop.f32.mrb[3].mxu0 }
 0x126   : > { %1435 = vpow2.f32 %v1225_v53  ;;  %v1226_v56 = vmul.f32 -1.442695, %v467_v54 }
 0x128   : > { %1437 = vpow2.f32 %v1226_v56 }
 0x129   : > { %v471_v57 = vpop.f32.mrb[4].mxu0 }
 0x12a   : > { %v472_v58 = vadd.f32 %v1893_v48, %v471_v57  ;;  %v473_v59 = vpop.f32.mrb[5].mxu0 }
 0x12b   : > { %v474_v60 = vpop.f32.mrb[6].mxu0 }
 0x12c   : > { %v1227_v61 = vmul.f32 -1.442695, %v472_v58  ;;  %v475_v62 = vadd.f32 %v1893_v48, %v474_v60  ;;  %v476_v63 = vpop.f32.mrb[7].mxu0 }
 0x12e   : > { %1439 = vpow2.f32 %v1227_v61  ;;  %v1228_v0 = vmul.f32 -1.442695, %v475_v62 }
 0x130   : > { %v1436_v1 = vpop.eup %1435  ;;  %1441 = vpow2.f32 %v1228_v0 }
 0x131   : > { %v574_v2 = vadd.f32 1.0, %v1436_v1  ;;  %v479_v3 = vpop.f32.mrb[8].mxu0 }
 0x132   : > { %v1438_v4 = vpop.eup %1437  ;;  %v480_v5 = vadd.f32 %v1893_v48, %v479_v3  ;;  %v481_v6 = vpop.f32.mrb[9].mxu0 }
 0x133   : > { %v575_v7 = vadd.f32 1.0, %v1438_v4  ;;  %v482_v8 = vpop.f32.mrb[10].mxu0  ;;  %1443 = vrcp.f32 %v574_v2 }
 0x134   : > { %v1229_v9 = vmul.f32 -1.442695, %v480_v5  ;;  %v483_v10 = vadd.f32 %v1893_v48, %v482_v8  ;;  %v484_v11 = vpop.f32.mrb[11].mxu0 }
 0x135   : > { %1445 = vrcp.f32 %v575_v7 }
 0x136   : > { %1447 = vpow2.f32 %v1229_v9  ;;  %v1230_v12 = vmul.f32 -1.442695, %v483_v10 }
 0x138   : > { %v1440_v13 = vpop.eup %1439  ;;  %1449 = vpow2.f32 %v1230_v12 }
 0x139   : > { %v576_v14 = vadd.f32 1.0, %v1440_v13  ;;  %v487_v15 = vpop.f32.mrb[12].mxu0 }
 0x13a   : > { %v1442_v16 = vpop.eup %1441  ;;  %v488_v17 = vadd.f32 %v1893_v48, %v487_v15  ;;  %v489_v18 = vpop.f32.mrb[13].mxu0 }
 0x13b   : > { %v577_v19 = vadd.f32 1.0, %v1442_v16  ;;  %v490_v20 = vpop.f32.mrb[14].mxu0  ;;  %1451 = vrcp.f32 %v576_v14 }
 0x13c   : > { %v1231_v21 = vmul.f32 -1.442695, %v488_v17  ;;  %v491_v22 = vadd.f32 %v1893_v48, %v490_v20  ;;  %v492_v23 = vpop.f32.mrb[15].mxu0 }
 0x13d   : > { %1453 = vrcp.f32 %v577_v19  ;;  %v1444_v24 = vpop.eup %1443 }
 0x13e   : > { %1455 = vpow2.f32 %v1231_v21  ;;  %v1232_v25 = vmul.f32 -1.442695, %v491_v22 }
 0x13f   : > { %v1446_v26 = vpop.eup %1445 }
 0x140   : > { %v1448_v27 = vpop.eup %1447  ;;  %1457 = vpow2.f32 %v1232_v25  ;;  %v622_v28 = vpack.c.bf16 %v1446_v26, %v1444_v24 }
 0x141   : > { %v578_v29 = vadd.f32 1.0, %v1448_v27  ;;  %v495_v30 = vpop.f32.mrb[16].mxu0 }
 0x142   : > { %v1450_v31 = vpop.eup %1449  ;;  %v496_v32 = vadd.f32 %v1893_v48, %v495_v30  ;;  %v497_v33 = vpop.f32.mrb[17].mxu0  ;;  %1314 = vmatprep.mubr.bf16.mxu1 %v622_v28 }
 0x143   : > { %v579_v34 = vadd.f32 1.0, %v1450_v31  ;;  %v498_v35 = vpop.f32.mrb[18].mxu0  ;;  %1315 = vmatmul.mubr.bf16.vlgmr.msra.gmra.mrb[0].mxu1 %v622_v28  ;;  %1459 = vrcp.f32 %v578_v29 }
 0x144   : > { %v1233_v36 = vmul.f32 -1.442695, %v496_v32  ;;  %v499_v37 = vadd.f32 %v1893_v48, %v498_v35  ;;  %v500_v38 = vpop.f32.mrb[19].mxu0 }
 0x145   : > { %1461 = vrcp.f32 %v579_v34  ;;  %v1452_v39 = vpop.eup %1451 }
 0x146   : > { %1463 = vpow2.f32 %v1233_v36  ;;  %v1234_v40 = vmul.f32 -1.442695, %v499_v37 }
 0x147   : > { %v1454_v41 = vpop.eup %1453 }
 0x148   : > { %v1456_v42 = vpop.eup %1455  ;;  %1465 = vpow2.f32 %v1234_v40  ;;  %v623_v43 = vpack.c.bf16 %v1454_v41, %v1452_v39  ;;  %v664_v41 = vlaneseq }
 0x149   : > { %v580_v44 = vadd.f32 1.0, %v1456_v42  ;;  %v503_v45 = vpop.f32.mrb[20].mxu0 }
 0x14a   : > { %v1458_v46 = vpop.eup %1457  ;;  %v504_v47 = vadd.f32 %v1893_v48, %v503_v45  ;;  %v505_v49 = vpop.f32.mrb[21].mxu0  ;;  %1316 = vmatprep.mubr.bf16.mxu1 %v623_v43  ;;  %v665_v42 = vshrl.u32 %v664_v41, 7 }
 0x14b   : > { %v581_v50 = vadd.f32 1.0, %v1458_v46  ;;  %v506_v51 = vpop.f32.mrb[22].mxu0  ;;  %1317 = vmatmul.mubr.bf16.gmra.mrb[4].mxu1 %v623_v43  ;;  %1467 = vrcp.f32 %v580_v44  ;;  %v662_v44 = vld [vmem:[%s2043_s4] sm:$0x3] }
 0x14c   : > { %v1235_v52 = vmul.f32 -1.442695, %v504_v47  ;;  %v507_v53 = vadd.f32 %v1893_v48, %v506_v51  ;;  %v508_v54 = vpop.f32.mrb[23].mxu0  ;;  %v666_v43 = vsub.s32 0, %v665_v42  ;;  %v670_v45 = vsub.s32 1, %v665_v42 }
 0x14d   : > { %1469 = vrcp.f32 %v581_v50  ;;  %v1460_v55 = vpop.eup %1459 }
 0x14e   : > { %1471 = vpow2.f32 %v1235_v52  ;;  %v1236_v56 = vmul.f32 -1.442695, %v507_v53  ;;  %v1914_v46 = vrot.slane %v662_v44, %v666_v43  ;;  %v1916_v47 = vrot.slane %v662_v44, %v670_v45 }
 0x14f   : > { %v1462_v57 = vpop.eup %1461 }
 0x150   : > { %v1464_v58 = vpop.eup %1463  ;;  %1473 = vpow2.f32 %v1236_v56  ;;  %v624_v59 = vpack.c.bf16 %v1462_v57, %v1460_v55 }
 0x151   : > { %v582_v60 = vadd.f32 1.0, %v1464_v58  ;;  %v511_v61 = vpop.f32.mrb[24].mxu0 }
 0x152   : > { %v1466_v62 = vpop.eup %1465  ;;  %v512_v63 = vadd.f32 %v1893_v48, %v511_v61  ;;  %v513_v0 = vpop.f32.mrb[25].mxu0  ;;  %1318 = vmatprep.mubr.bf16.mxu1 %v624_v59 }
 0x153   : > { %v583_v1 = vadd.f32 1.0, %v1466_v62  ;;  %v514_v2 = vpop.f32.mrb[26].mxu0  ;;  %1319 = vmatmul.mubr.bf16.gmra.mrb[8].mxu1 %v624_v59  ;;  %1475 = vrcp.f32 %v582_v60 }
 0x154   : > { %v1237_v3 = vmul.f32 -1.442695, %v512_v63  ;;  %v515_v4 = vadd.f32 %v1893_v48, %v514_v2  ;;  %v516_v5 = vpop.f32.mrb[27].mxu0 }
 0x155   : > { %1477 = vrcp.f32 %v583_v1  ;;  %v1468_v6 = vpop.eup %1467 }
 0x156   : > { %1479 = vpow2.f32 %v1237_v3  ;;  %v1238_v7 = vmul.f32 -1.442695, %v515_v4 }
 0x157   : > { %v1470_v8 = vpop.eup %1469 }
 0x158   : > { %v1472_v9 = vpop.eup %1471  ;;  %1481 = vpow2.f32 %v1238_v7  ;;  %v625_v10 = vpack.c.bf16 %v1470_v8, %v1468_v6 }
 0x159   : > { %v584_v11 = vadd.f32 1.0, %v1472_v9  ;;  %v519_v12 = vpop.f32.mrb[28].mxu0 }
 0x15a   : > { %v1474_v13 = vpop.eup %1473  ;;  %v520_v14 = vadd.f32 %v1893_v48, %v519_v12  ;;  %v521_v15 = vpop.f32.mrb[29].mxu0  ;;  %1320 = vmatprep.mubr.bf16.mxu1 %v625_v10 }
 0x15b   : > { %v585_v16 = vadd.f32 1.0, %v1474_v13  ;;  %v522_v17 = vpop.f32.mrb[30].mxu0  ;;  %1321 = vmatmul.mubr.bf16.gmra.mrb[12].mxu1 %v625_v10  ;;  %1483 = vrcp.f32 %v584_v11 }
 0x15c   : > { %v1239_v18 = vmul.f32 -1.442695, %v520_v14  ;;  %v523_v19 = vadd.f32 %v1893_v48, %v522_v17  ;;  %v524_v20 = vpop.f32.mrb[31].mxu0 }
 0x15d   : > { %1485 = vrcp.f32 %v585_v16  ;;  %v1476_v21 = vpop.eup %1475 }
 0x15e   : > { %1487 = vpow2.f32 %v1239_v18  ;;  %v1240_v22 = vmul.f32 -1.442695, %v523_v19 }
 0x15f   : > { %v1478_v23 = vpop.eup %1477 }
 0x160   : > { %v1480_v24 = vpop.eup %1479  ;;  %1489 = vpow2.f32 %v1240_v22  ;;  %v626_v25 = vpack.c.bf16 %v1478_v23, %v1476_v21 }
 0x161   : > { %v586_v26 = vadd.f32 1.0, %v1480_v24 }
 0x162   : > { %v1482_v27 = vpop.eup %1481  ;;  %1322 = vmatprep.mubr.bf16.mxu1 %v626_v25 }
 0x163   : > { %v587_v28 = vadd.f32 1.0, %v1482_v27  ;;  %1323 = vmatmul.mubr.bf16.gmra.mrb[16].mxu1 %v626_v25  ;;  %1491 = vrcp.f32 %v586_v26 }
 0x165   : > { %1493 = vrcp.f32 %v587_v28  ;;  %v1484_v29 = vpop.eup %1483 }
 0x167   : > { %v1486_v30 = vpop.eup %1485 }
 0x168   : > { %v1488_v31 = vpop.eup %1487  ;;  %v627_v48 = vpack.c.bf16 %v1486_v30, %v1484_v29 }
 0x169   : > { %v588_v32 = vadd.f32 1.0, %v1488_v31 }
 0x16a   : > { %v1490_v33 = vpop.eup %1489  ;;  %1324 = vmatprep.mubr.bf16.mxu1 %v627_v48 }
 0x16b   : > { %v589_v34 = vadd.f32 1.0, %v1490_v33  ;;  %1325 = vmatmul.mubr.bf16.gmra.mrb[20].mxu1 %v627_v48  ;;  %1495 = vrcp.f32 %v588_v32 }
 0x16d   : > { %1497 = vrcp.f32 %v589_v34  ;;  %v1492_v35 = vpop.eup %1491 }
 0x16f   : > { %v1494_v36 = vpop.eup %1493 }
 0x170   : > { %v628_v37 = vpack.c.bf16 %v1494_v36, %v1492_v35 }
 0x172   : > { %1326 = vmatprep.mubr.bf16.mxu1 %v628_v37 }
 0x173   : > { %1327 = vmatmul.mubr.bf16.gmra.mrb[24].mxu1 %v628_v37 }
 0x175   : > { %v1496_v38 = vpop.eup %1495 }
 0x177   : > { %v1498_v39 = vpop.eup %1497 }
 0x178   : > { %v629_v40 = vpack.c.bf16 %v1498_v39, %v1496_v38 }
 0x17a   : > { %1328 = vmatprep.mubr.bf16.mxu1 %v629_v40 }
 0x17b   : > { %1329 = vmatmul.mubr.bf16.gmra.mrb[28].mxu1 %v629_v40 }
 0x216   : > { %v804_v49 = vpop.f32.mrb[0].mxu1 }
 0x217   : > { %v805_v50 = vadd.f32 %v804_v49, %v1914_v46  ;;  %v806_v51 = vpop.f32.mrb[1].mxu1 }
 0x218   : > { %v807_v52 = vadd.f32 %v806_v51, %v1916_v47  ;;  %v808_v53 = vpop.f32.mrb[2].mxu1 }
 0x219   : > { %v1257_v54 = vmul.f32 -1.442695, %v805_v50  ;;  %v809_v55 = vadd.f32 %v808_v53, %v1914_v46  ;;  %v810_v56 = vpop.f32.mrb[3].mxu1 }
 0x21a   : > { %v1258_v57 = vmul.f32 -1.442695, %v807_v52  ;;  %v811_v58 = vadd.f32 %v810_v56, %v1916_v47 }
 0x21b   : > { %1499 = vpow2.f32 %v1257_v54  ;;  %v1259_v59 = vmul.f32 -1.442695, %v809_v55 }
 0x21c   : > { %1501 = vpow2.f32 %v1258_v57  ;;  %v1260_v60 = vmul.f32 -1.442695, %v811_v58 }
 0x21d   : > { %1503 = vpow2.f32 %v1259_v59 }
 0x21e   : > { %1505 = vpow2.f32 %v1260_v60  ;;  %v814_v61 = vpop.f32.mrb[4].mxu1 }
 0x21f   : > { %v815_v62 = vadd.f32 %v814_v61, %v1914_v46  ;;  %v816_v63 = vpop.f32.mrb[5].mxu1 }
 0x220   : > { %v817_v0 = vadd.f32 %v816_v63, %v1916_v47  ;;  %v818_v1 = vpop.f32.mrb[6].mxu1 }
 0x221   : > { %v1261_v2 = vmul.f32 -1.442695, %v815_v62  ;;  %v819_v3 = vadd.f32 %v818_v1, %v1914_v46  ;;  %v820_v4 = vpop.f32.mrb[7].mxu1 }
 0x222   : > { %v1262_v5 = vmul.f32 -1.442695, %v817_v0  ;;  %v821_v6 = vadd.f32 %v820_v4, %v1916_v47 }
 0x223   : > { %1507 = vpow2.f32 %v1261_v2  ;;  %v1263_v7 = vmul.f32 -1.442695, %v819_v3 }
 0x224   : > { %1509 = vpow2.f32 %v1262_v5  ;;  %v1264_v8 = vmul.f32 -1.442695, %v821_v6 }
 0x225   : > { %v1500_v9 = vpop.eup %1499  ;;  %1511 = vpow2.f32 %v1263_v7 }
 0x226   : > { %v1502_v10 = vpop.eup %1501  ;;  %v979_v11 = vadd.f32 1.0, %v1500_v9  ;;  %1513 = vpow2.f32 %v1264_v8  ;;  %v824_v12 = vpop.f32.mrb[8].mxu1 }
 0x227   : > { %v1504_v13 = vpop.eup %1503  ;;  %v980_v14 = vadd.f32 1.0, %v1502_v10  ;;  %v825_v15 = vadd.f32 %v824_v12, %v1914_v46  ;;  %v826_v16 = vpop.f32.mrb[9].mxu1 }
 0x228   : > { %v1506_v17 = vpop.eup %1505  ;;  %1515 = vrcp.f32 %v979_v11  ;;  %v981_v18 = vadd.f32 1.0, %v1504_v13  ;;  %v827_v19 = vadd.f32 %v826_v16, %v1916_v47  ;;  %v828_v20 = vpop.f32.mrb[10].mxu1 }
 0x229   : > { %1517 = vrcp.f32 %v980_v14  ;;  %v982_v21 = vadd.f32 1.0, %v1506_v17  ;;  %v1265_v22 = vmul.f32 -1.442695, %v825_v15  ;;  %v829_v23 = vadd.f32 %v828_v20, %v1914_v46  ;;  %v830_v24 = vpop.f32.mrb[11].mxu1 }
 0x22a   : > { %1519 = vrcp.f32 %v981_v18  ;;  %v1266_v25 = vmul.f32 -1.442695, %v827_v19  ;;  %v831_v26 = vadd.f32 %v830_v24, %v1916_v47 }
 0x22b   : > { %1521 = vrcp.f32 %v982_v21  ;;  %v1267_v27 = vmul.f32 -1.442695, %v829_v23 }
 0x22c   : > { %1523 = vpow2.f32 %v1265_v22  ;;  %v1268_v28 = vmul.f32 -1.442695, %v831_v26 }
 0x22d   : > { %v1508_v29 = vpop.eup %1507  ;;  %1525 = vpow2.f32 %v1266_v25 }
 0x22e   : > { %v1510_v30 = vpop.eup %1509  ;;  %v983_v31 = vadd.f32 1.0, %v1508_v29  ;;  %1527 = vpow2.f32 %v1267_v27  ;;  %v834_v48 = vpop.f32.mrb[12].mxu1 }
 0x22f   : > { %v1512_v32 = vpop.eup %1511  ;;  %v984_v33 = vadd.f32 1.0, %v1510_v30  ;;  %1529 = vpow2.f32 %v1268_v28  ;;  %v835_v34 = vadd.f32 %v834_v48, %v1914_v46  ;;  %v836_v35 = vpop.f32.mrb[13].mxu1 }
 0x230   : > { %v1514_v36 = vpop.eup %1513  ;;  %1531 = vrcp.f32 %v983_v31  ;;  %v985_v37 = vadd.f32 1.0, %v1512_v32  ;;  %v837_v38 = vadd.f32 %v836_v35, %v1916_v47  ;;  %v838_v39 = vpop.f32.mrb[14].mxu1 }
 0x231   : > { %1533 = vrcp.f32 %v984_v33  ;;  %v986_v40 = vadd.f32 1.0, %v1514_v36  ;;  %v1269_v41 = vmul.f32 -1.442695, %v835_v34  ;;  %v839_v42 = vadd.f32 %v838_v39, %v1914_v46  ;;  %v840_v43 = vpop.f32.mrb[15].mxu1 }
 0x232   : > { %v1516_v44 = vpop.eup %1515  ;;  %1535 = vrcp.f32 %v985_v37  ;;  %v1270_v45 = vmul.f32 -1.442695, %v837_v38  ;;  %v841_v49 = vadd.f32 %v840_v43, %v1916_v47 }
 0x233   : > { %v1518_v50 = vpop.eup %1517  ;;  %1075 = vst [vmem:[%s1937_s23] sm:$0xff] %v1516_v44  ;;  %1537 = vrcp.f32 %v986_v40  ;;  %v1271_v51 = vmul.f32 -1.442695, %v839_v42 }
 0x234   : > { %v1520_v52 = vpop.eup %1519  ;;  %1076 = vst [vmem:[%s1937_s23 + $0x8] sm:$0xff] %v1518_v50  ;;  %1539 = vpow2.f32 %v1269_v41  ;;  %v1272_v53 = vmul.f32 -1.442695, %v841_v49 }
 0x235   : > { %v1522_v54 = vpop.eup %1521  ;;  %1077 = vst [vmem:[%s1937_s23 + $0x10] sm:$0xff] %v1520_v52  ;;  %1541 = vpow2.f32 %v1270_v45 }
 0x236   : > { %v1524_v55 = vpop.eup %1523  ;;  %1078 = vst [vmem:[%s1937_s23 + $0x18] sm:$0xff] %v1522_v54  ;;  %1543 = vpow2.f32 %v1271_v51  ;;  %v844_v56 = vpop.f32.mrb[16].mxu1 }
 0x237   : > { %v1526_v57 = vpop.eup %1525  ;;  %v987_v58 = vadd.f32 1.0, %v1524_v55  ;;  %1545 = vpow2.f32 %v1272_v53  ;;  %v845_v59 = vadd.f32 %v844_v56, %v1914_v46  ;;  %v846_v60 = vpop.f32.mrb[17].mxu1 }
 0x238   : > { %v1528_v61 = vpop.eup %1527  ;;  %v988_v62 = vadd.f32 1.0, %v1526_v57  ;;  %v847_v63 = vadd.f32 %v846_v60, %v1916_v47  ;;  %v848_v0 = vpop.f32.mrb[18].mxu1 }
 0x239   : > { %v1530_v1 = vpop.eup %1529  ;;  %1547 = vrcp.f32 %v987_v58  ;;  %v989_v2 = vadd.f32 1.0, %v1528_v61  ;;  %v1273_v3 = vmul.f32 -1.442695, %v845_v59  ;;  %v849_v4 = vadd.f32 %v848_v0, %v1914_v46  ;;  %v850_v5 = vpop.f32.mrb[19].mxu1 }
 0x23a   : > { %v1532_v6 = vpop.eup %1531  ;;  %1549 = vrcp.f32 %v988_v62  ;;  %v990_v7 = vadd.f32 1.0, %v1530_v1  ;;  %v1274_v8 = vmul.f32 -1.442695, %v847_v63  ;;  %v851_v9 = vadd.f32 %v850_v5, %v1916_v47 }
 0x23b   : > { %v1534_v10 = vpop.eup %1533  ;;  %1079 = vst [vmem:[%s1937_s23 + $0x20] sm:$0xff] %v1532_v6  ;;  %1551 = vrcp.f32 %v989_v2  ;;  %v1275_v11 = vmul.f32 -1.442695, %v849_v4 }
 0x23c   : > { %v1536_v12 = vpop.eup %1535  ;;  %1080 = vst [vmem:[%s1937_s23 + $0x28] sm:$0xff] %v1534_v10  ;;  %1553 = vrcp.f32 %v990_v7  ;;  %v1276_v13 = vmul.f32 -1.442695, %v851_v9 }
 0x23d   : > { %v1538_v14 = vpop.eup %1537  ;;  %1081 = vst [vmem:[%s1937_s23 + $0x30] sm:$0xff] %v1536_v12  ;;  %1555 = vpow2.f32 %v1273_v3 }
 0x23e   : > { %v1540_v15 = vpop.eup %1539  ;;  %1082 = vst [vmem:[%s1937_s23 + $0x38] sm:$0xff] %v1538_v14  ;;  %1557 = vpow2.f32 %v1274_v8  ;;  %v854_v16 = vpop.f32.mrb[20].mxu1 }
 0x23f   : > { %v1542_v17 = vpop.eup %1541  ;;  %v991_v18 = vadd.f32 1.0, %v1540_v15  ;;  %1559 = vpow2.f32 %v1275_v11  ;;  %v855_v19 = vadd.f32 %v854_v16, %v1914_v46  ;;  %v856_v20 = vpop.f32.mrb[21].mxu1 }
 0x240   : > { %v1544_v21 = vpop.eup %1543  ;;  %v992_v22 = vadd.f32 1.0, %v1542_v17  ;;  %1561 = vpow2.f32 %v1276_v13  ;;  %v857_v23 = vadd.f32 %v856_v20, %v1916_v47  ;;  %v858_v24 = vpop.f32.mrb[22].mxu1 }
 0x241   : > { %v1546_v25 = vpop.eup %1545  ;;  %1563 = vrcp.f32 %v991_v18  ;;  %v993_v26 = vadd.f32 1.0, %v1544_v21  ;;  %v1277_v27 = vmul.f32 -1.442695, %v855_v19  ;;  %v859_v28 = vadd.f32 %v858_v24, %v1914_v46  ;;  %v860_v29 = vpop.f32.mrb[23].mxu1 }
 0x242   : > { %1565 = vrcp.f32 %v992_v22  ;;  %v994_v30 = vadd.f32 1.0, %v1546_v25  ;;  %v1278_v31 = vmul.f32 -1.442695, %v857_v23  ;;  %v861_v48 = vadd.f32 %v860_v29, %v1916_v47 }
 0x243   : > { %v1548_v32 = vpop.eup %1547  ;;  %1567 = vrcp.f32 %v993_v26  ;;  %v1279_v33 = vmul.f32 -1.442695, %v859_v28 }
 0x244   : > { %v1550_v34 = vpop.eup %1549  ;;  %1083 = vst [vmem:[%s1937_s23 + $0x40] sm:$0xff] %v1548_v32  ;;  %1569 = vrcp.f32 %v994_v30  ;;  %v1280_v35 = vmul.f32 -1.442695, %v861_v48 }
 0x245   : > { %v1552_v36 = vpop.eup %1551  ;;  %1084 = vst [vmem:[%s1937_s23 + $0x48] sm:$0xff] %v1550_v34  ;;  %1571 = vpow2.f32 %v1277_v27 }
 0x246   : > { %v1554_v37 = vpop.eup %1553  ;;  %1085 = vst [vmem:[%s1937_s23 + $0x50] sm:$0xff] %v1552_v36  ;;  %1573 = vpow2.f32 %v1278_v31  ;;  %v864_v38 = vpop.f32.mrb[24].mxu1 }
 0x247   : > { %v1556_v39 = vpop.eup %1555  ;;  %1086 = vst [vmem:[%s1937_s23 + $0x58] sm:$0xff] %v1554_v37  ;;  %1575 = vpow2.f32 %v1279_v33  ;;  %v865_v40 = vadd.f32 %v864_v38, %v1914_v46  ;;  %v866_v41 = vpop.f32.mrb[25].mxu1 }
 0x248   : > { %v1558_v42 = vpop.eup %1557  ;;  %v995_v43 = vadd.f32 1.0, %v1556_v39  ;;  %1577 = vpow2.f32 %v1280_v35  ;;  %v867_v44 = vadd.f32 %v866_v41, %v1916_v47  ;;  %v868_v45 = vpop.f32.mrb[26].mxu1 }
 0x249   : > { %v1560_v49 = vpop.eup %1559  ;;  %v996_v50 = vadd.f32 1.0, %v1558_v42  ;;  %v869_v51 = vadd.f32 %v868_v45, %v1914_v46  ;;  %v870_v52 = vpop.f32.mrb[27].mxu1  ;;  %v1281_v55 = vmul.f32 -1.442695, %v865_v40 }
 0x24a   : > { %v1562_v53 = vpop.eup %1561  ;;  %1579 = vrcp.f32 %v995_v43  ;;  %v997_v54 = vadd.f32 1.0, %v1560_v49  ;;  %v871_v56 = vadd.f32 %v870_v52, %v1916_v47  ;;  %v1282_v59 = vmul.f32 -1.442695, %v867_v44 }
 0x24b   : > { %v1564_v57 = vpop.eup %1563  ;;  %1581 = vrcp.f32 %v996_v50  ;;  %v998_v58 = vadd.f32 1.0, %v1562_v53  ;;  %v1283_v61 = vmul.f32 -1.442695, %v869_v51 }
 0x24c   : > { %v1566_v60 = vpop.eup %1565  ;;  %1087 = vst [vmem:[%s1937_s23 + $0x60] sm:$0xff] %v1564_v57  ;;  %1583 = vrcp.f32 %v997_v54  ;;  %v1284_v63 = vmul.f32 -1.442695, %v871_v56 }
 0x24d   : > { %v1568_v62 = vpop.eup %1567  ;;  %1088 = vst [vmem:[%s1937_s23 + $0x68] sm:$0xff] %v1566_v60  ;;  %1585 = vrcp.f32 %v998_v58 }
 0x24e   : > { %v1570_v0 = vpop.eup %1569  ;;  %1089 = vst [vmem:[%s1937_s23 + $0x70] sm:$0xff] %v1568_v62  ;;  %1587 = vpow2.f32 %v1281_v55  ;;  %v874_v1 = vpop.f32.mrb[28].mxu1 }
 0x24f   : > { %v1572_v2 = vpop.eup %1571  ;;  %1090 = vst [vmem:[%s1937_s23 + $0x78] sm:$0xff] %v1570_v0  ;;  %1589 = vpow2.f32 %v1282_v59  ;;  %v875_v3 = vadd.f32 %v874_v1, %v1914_v46  ;;  %v876_v4 = vpop.f32.mrb[29].mxu1 }
 0x250   : > { %v1574_v5 = vpop.eup %1573  ;;  %v999_v6 = vadd.f32 1.0, %v1572_v2  ;;  %1591 = vpow2.f32 %v1283_v61  ;;  %v877_v7 = vadd.f32 %v876_v4, %v1916_v47  ;;  %v878_v8 = vpop.f32.mrb[30].mxu1 }
 0x251   : > { %v1576_v9 = vpop.eup %1575  ;;  %v1000_v10 = vadd.f32 1.0, %v1574_v5  ;;  %1593 = vpow2.f32 %v1284_v63  ;;  %v879_v11 = vadd.f32 %v878_v8, %v1914_v46  ;;  %v880_v12 = vpop.f32.mrb[31].mxu1  ;;  %v1285_v15 = vmul.f32 -1.442695, %v875_v3 }
 0x252   : > { %v1578_v13 = vpop.eup %1577  ;;  %1595 = vrcp.f32 %v999_v6  ;;  %v1001_v14 = vadd.f32 1.0, %v1576_v9  ;;  %v881_v16 = vadd.f32 %v880_v12, %v1916_v47  ;;  %v1286_v18 = vmul.f32 -1.442695, %v877_v7 }
 0x253   : > { %1597 = vrcp.f32 %v1000_v10  ;;  %v1002_v17 = vadd.f32 1.0, %v1578_v13  ;;  %v1287_v20 = vmul.f32 -1.442695, %v879_v11 }
 0x254   : > { %v1580_v19 = vpop.eup %1579  ;;  %1599 = vrcp.f32 %v1001_v14  ;;  %v1288_v46 = vmul.f32 -1.442695, %v881_v16 }
 0x255   : > { %v1582_v21 = vpop.eup %1581  ;;  %1091 = vst [vmem:[%s1937_s23 + $0x80] sm:$0xff] %v1580_v19  ;;  %1601 = vrcp.f32 %v1002_v17 }
 0x256   : > { %v1584_v22 = vpop.eup %1583  ;;  %1092 = vst [vmem:[%s1937_s23 + $0x88] sm:$0xff] %v1582_v21  ;;  %1603 = vpow2.f32 %v1285_v15 }
 0x257   : > { %v1586_v23 = vpop.eup %1585  ;;  %1093 = vst [vmem:[%s1937_s23 + $0x90] sm:$0xff] %v1584_v22  ;;  %1605 = vpow2.f32 %v1286_v18 }
 0x258   : > { %v1588_v24 = vpop.eup %1587  ;;  %1094 = vst [vmem:[%s1937_s23 + $0x98] sm:$0xff] %v1586_v23  ;;  %1607 = vpow2.f32 %v1287_v20 }
 0x259   : > { %v1590_v47 = vpop.eup %1589  ;;  %v1003_v25 = vadd.f32 1.0, %v1588_v24  ;;  %1609 = vpow2.f32 %v1288_v46 }
 0x25a   : > { %v1592_v26 = vpop.eup %1591  ;;  %v1004_v27 = vadd.f32 1.0, %v1590_v47 }
 0x25b   : > { %v1594_v28 = vpop.eup %1593  ;;  %1611 = vrcp.f32 %v1003_v25  ;;  %v1005_v29 = vadd.f32 1.0, %v1592_v26 }
 0x25c   : > { %v1596_v30 = vpop.eup %1595  ;;  %1613 = vrcp.f32 %v1004_v27  ;;  %v1006_v31 = vadd.f32 1.0, %v1594_v28 }
 0x25d   : > { %v1598_v48 = vpop.eup %1597  ;;  %1095 = vst [vmem:[%s1937_s23 + $0xa0] sm:$0xff] %v1596_v30  ;;  %1615 = vrcp.f32 %v1005_v29 }
 0x25e   : > { %v1600_v32 = vpop.eup %1599  ;;  %1096 = vst [vmem:[%s1937_s23 + $0xa8] sm:$0xff] %v1598_v48  ;;  %1617 = vrcp.f32 %v1006_v31 }
 0x25f   : > { %v1602_v33 = vpop.eup %1601  ;;  %1097 = vst [vmem:[%s1937_s23 + $0xb0] sm:$0xff] %v1600_v32 }
 0x260   : > { %v1604_v34 = vpop.eup %1603  ;;  %1098 = vst [vmem:[%s1937_s23 + $0xb8] sm:$0xff] %v1602_v33 }
 0x261   : > { %v1606_v35 = vpop.eup %1605  ;;  %v1007_v36 = vadd.f32 1.0, %v1604_v34 }
 0x262   : > { %v1608_v37 = vpop.eup %1607  ;;  %v1008_v38 = vadd.f32 1.0, %v1606_v35 }
 0x263   : > { %v1610_v39 = vpop.eup %1609  ;;  %1619 = vrcp.f32 %v1007_v36  ;;  %v1009_v40 = vadd.f32 1.0, %v1608_v37 }
 0x264   : > { %1621 = vrcp.f32 %v1008_v38  ;;  %v1010_v41 = vadd.f32 1.0, %v1610_v39 }
 0x265   : > { %v1612_v42 = vpop.eup %1611  ;;  %1623 = vrcp.f32 %v1009_v40 }
 0x266   : > { %v1614_v43 = vpop.eup %1613  ;;  %1099 = vst [vmem:[%s1937_s23 + $0xc0] sm:$0xff] %v1612_v42  ;;  %1625 = vrcp.f32 %v1010_v41 }
 0x267   : > { %v1616_v44 = vpop.eup %1615  ;;  %1100 = vst [vmem:[%s1937_s23 + $0xc8] sm:$0xff] %v1614_v43 }
 0x268   : > { %v1618_v45 = vpop.eup %1617  ;;  %1101 = vst [vmem:[%s1937_s23 + $0xd0] sm:$0xff] %v1616_v44 }
 0x269   : > { %1102 = vst [vmem:[%s1937_s23 + $0xd8] sm:$0xff] %v1618_v45 }
 0x26d   : > { %v1620_v49 = vpop.eup %1619 }
 0x26e   : > { %v1622_v50 = vpop.eup %1621  ;;  %1103 = vst [vmem:[%s1937_s23 + $0xe0] sm:$0xff] %v1620_v49 }
 0x26f   : > { %v1624_v51 = vpop.eup %1623  ;;  %1104 = vst [vmem:[%s1937_s23 + $0xe8] sm:$0xff] %v1622_v50 }
 0x270   : > { %v1626_v52 = vpop.eup %1625  ;;  %1105 = vst [vmem:[%s1937_s23 + $0xf0] sm:$0xff] %v1624_v51 }
 0x271   : > { %1106 = vst [vmem:[%s1937_s23 + $0xf8] sm:$0xff] %v1626_v52 }
 0x272   : > { %1640 = shalt.err (!%p1637_p3)
}
 0x273   : > { %s1641_s12 = scalar_lea.hbm %s1989_s7, 4096  ;;  %s1645_s15 = scalar_lea.hbm %s2044_s5, 8192 }
 0x274   : > { %p1642_p4 = scmp.ne.s32.totalorder %s1989_s7, %s1641_s12  ;;  %p1646_p9 = scmp.lt.u32.totalorder %s1989_s7, %s2044_s5 }
 0x275   : > { %p1647_p10 = scmp.lt.u32.totalorder %s1645_s15, %s1641_s12  ;;  %p1649_p12 = scmp.lt.u32.totalorder %s1641_s12, %s1989_s7 }
 0x276   : > { %p1643_p7 = pnand %p1642_p4, %p1762_p5 }
 0x277   : > { %p1648_p11 = por %p1647_p10, %p1646_p9 }
 0x278   : > { %p1644_p8 = pneg %p1643_p7 }
 0x279   : > { %p1650_p13 = por %p1649_p12, %p1648_p11 }
 0x27b   : > { %p1651_p0 = pnand %p1650_p13, %p1644_p8 }
 0x27d   : > { %1654 = shalt.err (!%p1651_p0)
}
 0x27e   : > { %s1692_s23 = smov 256   ;;  %s1693_s26 = smov 16  }
 0x27f   : > { %1330 = dma.vmem_to_hbm [thread:$0]  (%p1762_p5), %s1991_s25, 4096, %s1989_s7, %s1998_s22, %s1692_s23, %s1692_s23, %s1693_s26  }
 0x280 PF: > { %p1336_p1 = scmp.ge.s32.totalorder %s1689_s21, 2  ;;  %s1137_s30 = sand.u32 1, %s1677_s18  }
 0x281   : > { %s1138_s6 = scalar_lea.sflag [#allocation3], %s1137_s30 }
 0x282   : > { %p1333_p2 = pnand %p1336_p1, %p1766_p6 }
 0x284   : > { %1672 = dma.done.wait (!%p1333_p2), %s1138_s6, 4096  }
 0x285   : > { %1674 = vsyncadd (!%p1333_p2), %s1138_s6, 4294963200  ;;  %p15_p3 = scmp.ge.s32.totalorder %s1749_s24, 4   ;;  %s2047_s18 = smov %s1681_s19 }
 0x286   : > { %s2048_s19 = smov %s1685_s20  ;;  %s2049_s20 = smov %s1760_s27 }
 0x287   : > { %s2050_s21 = smov %s1749_s24  ;;  %17 = sbr.rel (!%p15_p3) target bundleno = 3 (0x3), region = 75 }
 0x28e   :  { %1143 = vsyncpa [#allocation3], 1 }
 0x28f   :  { %1145 = vsyncpa [#allocation3 + $0x1], 1 }

</bundles_post_ra>
